<compile_context>
chip_gen: v7x
topology: tpu7x:2x2x1
jax: 0.10.0
libtpu: 0.0.40
codegen_flags: <defaults>
</compile_context>

<pallas_src>
import functools

import jax
import jax.numpy as jnp
from jax.experimental import pallas as pl
from jax.experimental.pallas import tpu as pltpu


def _linear_add_kernel(w_ref, b_ref, x_ref, add_ref, o_ref):
    # w_ref:   (C_out, C_in)  weight       (VMEM, tiny)
    # b_ref:   (C_out, 1)     bias         (VMEM, broadcast over lanes)
    # x_ref:   (C_in, HW)     input, spatial axis on lanes
    # add_ref: (C_out, HW)    add-on tensor
    # o_ref:   (C_out, HW)    output
    x = x_ref[...]                                   # (C_in, HW)
    w = w_ref[...]                                   # (C_out, C_in)
    # bias + add, accumulated in f32.
    acc = add_ref[...].astype(jnp.float32) + b_ref[...].astype(jnp.float32)
    # Unrolled VPU contraction over the tiny C_in=3 axis:
    #   acc += w[:, c] (lane-broadcast) * x[c, :] (sublane-broadcast)
    for c in range(x_ref.shape[0]):                  # static Python unroll
        acc = acc + w[:, c:c + 1].astype(jnp.float32) * x[c:c + 1, :].astype(jnp.float32)
    o_ref[...] = acc.astype(o_ref.dtype)


@jax.jit
def model_forward(x1, add_on, weight, bias):
    # x1:     (N, C_in, H, W)
    # add_on: (N, C_out, H, W)
    # weight: (C_out, C_in)
    # bias:   (C_out,)
    n, c_in, h, w = x1.shape
    c_out = weight.shape[0]
    assert n == 1, "kernel written for batch=1 (matches the reference shapes)"
    hw = h * w

    x_flat = x1.reshape(c_in, hw)            # (3, 4096)  — spatial on lanes
    add_flat = add_on.reshape(c_out, hw)     # (8, 4096)
    b_col = bias.reshape(c_out, 1)           # (8, 1)

    # Single invocation (no grid): full arrays live in VMEM, one DMA in/out.
    vmem_spec = pl.BlockSpec(memory_space=pltpu.MemorySpace.VMEM)
    out_flat = pl.pallas_call(
        _linear_add_kernel,
        out_shape=jax.ShapeDtypeStruct((c_out, hw), x1.dtype),
        in_specs=[vmem_spec, vmem_spec, vmem_spec, vmem_spec],
        out_specs=vmem_spec,
    )(weight, b_col, x_flat, add_flat)

    return out_flat.reshape(n, c_out, h, w)


def reference_forward(x1, add_on, weight, bias):
    # Channel-wise linear: einsum over C_in, same as a 1x1 conv.
    y = jnp.einsum("oc,nchw->nohw", weight, x1) + bias[None, :, None, None]
    return y + add_on


if __name__ == "__main__":
    key = jax.random.PRNGKey(0)
    k_x, k_add, k_w, k_b = jax.random.split(key, 4)

    # Shapes implied by the module.
    x1 = jax.random.normal(k_x, (1, 3, 64, 64), dtype=jnp.float32)
    add_on = jax.random.normal(k_add, (1, 8, 64, 64), dtype=jnp.float32)

    # Deterministic parameters for Linear(3, 8).
    weight = jax.random.normal(k_w, (8, 3), dtype=jnp.float32) * 0.1
    bias = jax.random.normal(k_b, (8,), dtype=jnp.float32) * 0.1

    out = model_forward(x1, add_on, weight, bias)
    out = jax.block_until_ready(out)

    ref = reference_forward(x1, add_on, weight, bias)
    assert out.shape == (1, 8, 64, 64), out.shape
    assert jnp.allclose(out, ref, atol=1e-5, rtol=1e-5), "mismatch vs reference"

    print("KERNEL_OK")
</pallas_src>

<mosaic_0001>
module attributes {stable_mosaic.version = 11 : i64} {
  func.func @_linear_add_kernel(%arg0: memref<8x3xf32, #tpu.memory_space<vmem>>, %arg1: memref<8x1xf32, #tpu.memory_space<vmem>>, %arg2: memref<3x4096xf32, #tpu.memory_space<vmem>>, %arg3: memref<8x4096xf32, #tpu.memory_space<vmem>>, %arg4: memref<8x4096xf32, #tpu.memory_space<vmem>>) attributes {dimension_semantics = [], scalar_prefetch = 0 : i64, scratch_operands = 0 : i64, tpu.core_type = #tpu.core_type<tc>} {
    %c0 = arith.constant 0 : index
    %c0_0 = arith.constant 0 : index
    %0 = vector.load %arg2[%c0, %c0_0] : memref<3x4096xf32, #tpu.memory_space<vmem>>, vector<3x4096xf32>
    %c0_1 = arith.constant 0 : index
    %c0_2 = arith.constant 0 : index
    %1 = vector.load %arg0[%c0_1, %c0_2] : memref<8x3xf32, #tpu.memory_space<vmem>>, vector<8x3xf32>
    %c0_3 = arith.constant 0 : index
    %c0_4 = arith.constant 0 : index
    %2 = vector.load %arg3[%c0_3, %c0_4] : memref<8x4096xf32, #tpu.memory_space<vmem>>, vector<8x4096xf32>
    %c0_5 = arith.constant 0 : index
    %c0_6 = arith.constant 0 : index
    %3 = vector.load %arg1[%c0_5, %c0_6] : memref<8x1xf32, #tpu.memory_space<vmem>>, vector<8x1xf32>
    %4 = vector.broadcast %3 : vector<8x1xf32> to vector<8x4096xf32>
    %5 = arith.addf %2, %4 : vector<8x4096xf32>
    %6 = vector.extract_strided_slice %1 {offsets = [0, 0], sizes = [8, 1], strides = [1, 1]} : vector<8x3xf32> to vector<8x1xf32>
    %7 = vector.extract_strided_slice %0 {offsets = [0, 0], sizes = [1, 4096], strides = [1, 1]} : vector<3x4096xf32> to vector<1x4096xf32>
    %8 = vector.broadcast %6 : vector<8x1xf32> to vector<8x4096xf32>
    %9 = vector.broadcast %7 : vector<1x4096xf32> to vector<8x4096xf32>
    %10 = arith.mulf %8, %9 : vector<8x4096xf32>
    %11 = arith.addf %5, %10 : vector<8x4096xf32>
    %12 = vector.extract_strided_slice %1 {offsets = [0, 1], sizes = [8, 1], strides = [1, 1]} : vector<8x3xf32> to vector<8x1xf32>
    %13 = vector.extract_strided_slice %0 {offsets = [1, 0], sizes = [1, 4096], strides = [1, 1]} : vector<3x4096xf32> to vector<1x4096xf32>
    %14 = vector.broadcast %12 : vector<8x1xf32> to vector<8x4096xf32>
    %15 = vector.broadcast %13 : vector<1x4096xf32> to vector<8x4096xf32>
    %16 = arith.mulf %14, %15 : vector<8x4096xf32>
    %17 = arith.addf %11, %16 : vector<8x4096xf32>
    %18 = vector.extract_strided_slice %1 {offsets = [0, 2], sizes = [8, 1], strides = [1, 1]} : vector<8x3xf32> to vector<8x1xf32>
    %19 = vector.extract_strided_slice %0 {offsets = [2, 0], sizes = [1, 4096], strides = [1, 1]} : vector<3x4096xf32> to vector<1x4096xf32>
    %20 = vector.broadcast %18 : vector<8x1xf32> to vector<8x4096xf32>
    %21 = vector.broadcast %19 : vector<1x4096xf32> to vector<8x4096xf32>
    %22 = arith.mulf %20, %21 : vector<8x4096xf32>
    %23 = arith.addf %17, %22 : vector<8x4096xf32>
    %c0_7 = arith.constant 0 : index
    %c0_8 = arith.constant 0 : index
    %24 = vector.load %arg4[%c0_7, %c0_8] : memref<8x4096xf32, #tpu.memory_space<vmem>>, vector<8x4096xf32>
    tpu.vector_store %arg4[%c0_7, %c0_8], %23 {strides = array<i32>} : memref<8x4096xf32, #tpu.memory_space<vmem>>, vector<8x4096xf32>,
    return
  }
}

</mosaic_0001>

<bundles_post_ra>
// kernel: model_forward.1
= control target key start
LH: loop header
LB: loop body
LE: loop exit
PB: predicated region body
PF: predicated region fallthrough
CT: control target
= control target key end

     0   :  { %v1232_v0 = vmov 0   ;;  %v1233_v2 = vmov 1   ;;  %v1234_v4 = vmov 2   ;;  %v125_v5 = vlaneseq  ;;  %s2422_s1 = inlined_call_operand.vmem [shape: f32[8,1], index: 1, kind: input, shape index: {}]   ;;  %s2423_s0 = inlined_call_operand.vmem [shape: f32[8,3], index: 0, kind: input, shape index: {}]   ;;  %s2424_s2 = inlined_call_operand.vmem [shape: f32[3,4096], index: 2, kind: input, shape index: {}]   ;;  %s2425_s3 = inlined_call_operand.vmem [shape: f32[8,4096], index: 3, kind: input, shape index: {}]   ;;  %s2426_s4 = inlined_call_operand.vmem [shape: f32[8,4096], index: 4, kind: output, shape index: {}]  }
   0x1   :  { %1228 = vset.pattern.permute.xlu0 %v1232_v0  ;;  %v66_v1 = vld [vmem:[%s2422_s1] sm:$0xff]  ;;  %1229 = vset.pattern.permute.xlu1 %v1233_v2  ;;  %v1282_v10 = vld [vmem:[%s2424_s2 + $0x8] sm:$0x77]  ;;  %v1287_v11 = vld [vmem:[%s2424_s2 + $0x10] sm:$0x77] }
   0x2   :  { %v33_v3 = vld [vmem:[%s2423_s0] sm:$0xff]  ;;  %69 = vperm.xlu0 %1228, %v66_v1   ;;  %v1266_v6 = vshrl.u32 %v125_v5, 7  ;;  %v1292_v12 = vld [vmem:[%s2424_s2 + $0x18] sm:$0x77]  ;;  %v1302_v14 = vld [vmem:[%s2424_s2 + $0x28] sm:$0x77] }
   0x3   :  { %478 = vperm.xlu1 %1229, %v33_v3   ;;  %v1277_v9 = vld [vmem:[%s2424_s2] sm:$0x77]  ;;  %v1307_v15 = vld [vmem:[%s2424_s2 + $0x30] sm:$0x77]  ;;  %v1322_v20 = vld [vmem:[%s2424_s2 + $0x38] sm:$0x77] }
   0x4   :  { %v1269_v7 = vsub.s32 0, %v1266_v6  ;;  %v1272_v8 = vsub.s32 4, %v1266_v6  ;;  %v1297_v13 = vld [vmem:[%s2424_s2 + $0x20] sm:$0x77]  ;;  %v1314_v18 = vsub.s32 1, %v1266_v6  ;;  %v1317_v19 = vsub.s32 2, %v1266_v6 }
   0x5   :  { %v1327_v21 = vld [vmem:[%s2424_s2 + $0x40] sm:$0x77]  ;;  %v1340_v26 = vld [vmem:[%s2424_s2 + $0x48] sm:$0x77]  ;;  %v1345_v27 = vld [vmem:[%s2424_s2 + $0x50] sm:$0x77] }
   0x6   :  { %106 = vperm.xlu0 %1228, %v33_v3   ;;  %v128_v16 = vrot.slane %v1277_v9, %v1269_v7  ;;  %v132_v17 = vrot.slane %v1277_v9, %v1272_v8  ;;  %v136_v22 = vrot.slane %v1282_v10, %v1269_v7  ;;  %v140_v23 = vrot.slane %v1282_v10, %v1272_v8  ;;  %v1358_v32 = vld [vmem:[%s2424_s2 + $0x58] sm:$0x77]  ;;  %v1363_v33 = vld [vmem:[%s2424_s2 + $0x60] sm:$0x77]  ;;  %v1376_v38 = vld [vmem:[%s2424_s2 + $0x68] sm:$0x77] }
   0x7   :  { %1230 = vset.pattern.permute.xlu1 %v1234_v4  ;;  %v144_v24 = vrot.slane %v1287_v11, %v1269_v7  ;;  %v148_v25 = vrot.slane %v1287_v11, %v1272_v8  ;;  %v152_v28 = vrot.slane %v1292_v12, %v1269_v7  ;;  %v156_v29 = vrot.slane %v1292_v12, %v1272_v8  ;;  %v1381_v39 = vld [vmem:[%s2424_s2 + $0x70] sm:$0x77]  ;;  %v1394_v44 = vld [vmem:[%s2424_s2 + $0x78] sm:$0x77] }
   0x8   :  { %834 = vperm.xlu1 %1230, %v33_v3   ;;  %v160_v30 = vrot.slane %v1297_v13, %v1269_v7  ;;  %v164_v31 = vrot.slane %v1297_v13, %v1272_v8  ;;  %v168_v34 = vrot.slane %v1302_v14, %v1269_v7  ;;  %v172_v35 = vrot.slane %v1302_v14, %v1272_v8 }
   0x9   :  { %v176_v36 = vrot.slane %v1307_v15, %v1269_v7  ;;  %v180_v37 = vrot.slane %v1307_v15, %v1272_v8  ;;  %v184_v40 = vrot.slane %v1322_v20, %v1269_v7  ;;  %v188_v41 = vrot.slane %v1322_v20, %v1272_v8 }
   0xa   :  { %1231 = vset.pattern.permute.xlu0 %v1234_v4  ;;  %v192_v42 = vrot.slane %v1327_v21, %v1269_v7  ;;  %v196_v43 = vrot.slane %v1327_v21, %v1272_v8  ;;  %v200_v45 = vrot.slane %v1340_v26, %v1269_v7  ;;  %v204_v46 = vrot.slane %v1340_v26, %v1272_v8 }
   0xb   :  { %v208_v47 = vrot.slane %v1345_v27, %v1269_v7  ;;  %v212_v48 = vrot.slane %v1345_v27, %v1272_v8  ;;  %v216_v49 = vrot.slane %v1358_v32, %v1269_v7  ;;  %v220_v50 = vrot.slane %v1358_v32, %v1272_v8 }
   0xc   :  { %v224_v51 = vrot.slane %v1363_v33, %v1269_v7  ;;  %v228_v52 = vrot.slane %v1363_v33, %v1272_v8  ;;  %v232_v53 = vrot.slane %v1376_v38, %v1269_v7  ;;  %v236_v54 = vrot.slane %v1376_v38, %v1272_v8 }
   0xd   :  { %v240_v55 = vrot.slane %v1381_v39, %v1269_v7  ;;  %v244_v56 = vrot.slane %v1381_v39, %v1272_v8  ;;  %v248_v57 = vrot.slane %v1394_v44, %v1269_v7  ;;  %v252_v58 = vrot.slane %v1394_v44, %v1272_v8 }
   0xe   :  { %v1425_v59 = vrot.slane %v128_v16, %v1269_v7  ;;  %v1428_v60 = vrot.slane %v132_v17, %v1269_v7  ;;  %v1431_v61 = vrot.slane %v136_v22, %v1269_v7  ;;  %v1434_v62 = vrot.slane %v140_v23, %v1269_v7 }
   0xf   :  { %v1437_v63 = vrot.slane %v144_v24, %v1269_v7  ;;  %v1440_v0 = vrot.slane %v148_v25, %v1269_v7  ;;  %v1443_v1 = vrot.slane %v152_v28, %v1269_v7  ;;  %v1446_v2 = vrot.slane %v156_v29, %v1269_v7 }
  0x10   :  { %v1449_v3 = vrot.slane %v160_v30, %v1269_v7  ;;  %v1452_v4 = vrot.slane %v164_v31, %v1269_v7  ;;  %v1455_v5 = vrot.slane %v168_v34, %v1269_v7  ;;  %v1458_v8 = vrot.slane %v172_v35, %v1269_v7 }
  0x11   :  { %2427 = vst [vmem:[#allocation2_spill] sm:$0xff] %v1443_v1  ;;  %2428 = vst [vmem:[#allocation3_spill] sm:$0xff] %v1446_v2  ;;  %v1461_v16 = vrot.slane %v176_v36, %v1269_v7  ;;  %v1464_v17 = vrot.slane %v180_v37, %v1269_v7  ;;  %v1467_v22 = vrot.slane %v184_v40, %v1269_v7  ;;  %v1500_v37 = vsub.s32 5, %v1266_v6 }
  0x12   :  { %2429 = vst [vmem:[#allocation4_spill] sm:$0xff] %v1449_v3  ;;  %2430 = vst [vmem:[#allocation5_spill] sm:$0xff] %v1452_v4  ;;  %v1470_v23 = vrot.slane %v188_v41, %v1269_v7  ;;  %v1473_v24 = vrot.slane %v192_v42, %v1269_v7  ;;  %v1476_v25 = vrot.slane %v196_v43, %v1269_v7 }
  0x13   :  { %2431 = vst [vmem:[#allocation6_spill] sm:$0xff] %v1455_v5  ;;  %2432 = vst [vmem:[#allocation7_spill] sm:$0xff] %v1458_v8  ;;  %v1479_v28 = vrot.slane %v200_v45, %v1269_v7  ;;  %v1482_v29 = vrot.slane %v204_v46, %v1269_v7  ;;  %v1485_v30 = vrot.slane %v208_v47, %v1269_v7 }
  0x14   :  { %2433 = vst [vmem:[#allocation8_spill] sm:$0xff] %v1461_v16  ;;  %2434 = vst [vmem:[#allocation9_spill] sm:$0xff] %v1464_v17  ;;  %v1488_v31 = vrot.slane %v212_v48, %v1269_v7  ;;  %v1491_v34 = vrot.slane %v216_v49, %v1269_v7  ;;  %v1494_v35 = vrot.slane %v220_v50, %v1269_v7 }
  0x15   :  { %2435 = vst [vmem:[#allocation10_spill] sm:$0xff] %v1467_v22  ;;  %2436 = vst [vmem:[#allocation11_spill] sm:$0xff] %v1470_v23  ;;  %v1497_v36 = vrot.slane %v224_v51, %v1269_v7  ;;  %v1503_v40 = vrot.slane %v228_v52, %v1269_v7  ;;  %v1506_v41 = vrot.slane %v232_v53, %v1269_v7 }
  0x16   :  { %2437 = vst [vmem:[#allocation12_spill] sm:$0xff] %v1473_v24  ;;  %2438 = vst [vmem:[#allocation13_spill] sm:$0xff] %v1476_v25  ;;  %v1509_v42 = vrot.slane %v236_v54, %v1269_v7  ;;  %v1512_v43 = vrot.slane %v240_v55, %v1269_v7  ;;  %v1515_v45 = vrot.slane %v244_v56, %v1269_v7 }
  0x17   :  { %2439 = vst [vmem:[#allocation14_spill] sm:$0xff] %v1479_v28  ;;  %2440 = vst [vmem:[#allocation15_spill] sm:$0xff] %v1482_v29  ;;  %v1518_v46 = vrot.slane %v248_v57, %v1269_v7  ;;  %v1521_v47 = vrot.slane %v252_v58, %v1269_v7  ;;  %v484_v48 = vrot.slane %v1277_v9, %v1314_v18 }
  0x18   :  { %2441 = vst [vmem:[#allocation16_spill] sm:$0xff] %v1485_v30  ;;  %2442 = vst [vmem:[#allocation17_spill] sm:$0xff] %v1488_v31  ;;  %v492_v49 = vrot.slane %v1282_v10, %v1314_v18  ;;  %v500_v50 = vrot.slane %v1287_v11, %v1314_v18  ;;  %v508_v51 = vrot.slane %v1292_v12, %v1314_v18 }
  0x19   :  { %2443 = vst [vmem:[#allocation18_spill] sm:$0xff] %v1491_v34  ;;  %2444 = vst [vmem:[#allocation19_spill] sm:$0xff] %v1494_v35  ;;  %v516_v52 = vrot.slane %v1297_v13, %v1314_v18  ;;  %v488_v53 = vrot.slane %v1277_v9, %v1500_v37  ;;  %v496_v7 = vrot.slane %v1282_v10, %v1500_v37 }
  0x1a   :  { %2445 = vst [vmem:[#allocation20_spill] sm:$0xff] %v1497_v36  ;;  %2446 = vst [vmem:[#allocation21_spill] sm:$0xff] %v1503_v40  ;;  %v524_v54 = vrot.slane %v1302_v14, %v1314_v18  ;;  %v532_v55 = vrot.slane %v1307_v15, %v1314_v18  ;;  %v504_v56 = vrot.slane %v1287_v11, %v1500_v37 }
  0x1b   :  { %2447 = vst [vmem:[#allocation22_spill] sm:$0xff] %v1506_v41  ;;  %2448 = vst [vmem:[#allocation23_spill] sm:$0xff] %v1509_v42  ;;  %v512_v57 = vrot.slane %v1292_v12, %v1500_v37  ;;  %v520_v58 = vrot.slane %v1297_v13, %v1500_v37  ;;  %v548_v42 = vrot.slane %v1327_v21, %v1314_v18 }
  0x1c   :  { %2449 = vst [vmem:[#allocation24_spill] sm:$0xff] %v1512_v43  ;;  %2450 = vst [vmem:[#allocation25_spill] sm:$0xff] %v1515_v45  ;;  %v540_v45 = vrot.slane %v1322_v20, %v1314_v18  ;;  %v544_v43 = vrot.slane %v1322_v20, %v1500_v37  ;;  %v552_v41 = vrot.slane %v1327_v21, %v1500_v37 }
  0x1d   :  { %2451 = vst [vmem:[#allocation26_spill] sm:$0xff] %v1518_v46  ;;  %2452 = vst [vmem:[#allocation27_spill] sm:$0xff] %v1521_v47  ;;  %v528_v47 = vrot.slane %v1302_v14, %v1500_v37  ;;  %v536_v46 = vrot.slane %v1307_v15, %v1500_v37  ;;  %v556_v40 = vrot.slane %v1340_v26, %v1314_v18 }
  0x1e   :  { %v560_v36 = vrot.slane %v1340_v26, %v1500_v37  ;;  %v564_v35 = vrot.slane %v1345_v27, %v1314_v18  ;;  %v568_v34 = vrot.slane %v1345_v27, %v1500_v37  ;;  %v572_v31 = vrot.slane %v1358_v32, %v1314_v18 }
  0x1f   :  { %v576_v30 = vrot.slane %v1358_v32, %v1500_v37  ;;  %v580_v29 = vrot.slane %v1363_v33, %v1314_v18  ;;  %v584_v28 = vrot.slane %v1363_v33, %v1500_v37  ;;  %v588_v25 = vrot.slane %v1376_v38, %v1314_v18 }
  0x20   :  { %v592_v24 = vrot.slane %v1376_v38, %v1500_v37  ;;  %v596_v23 = vrot.slane %v1381_v39, %v1314_v18  ;;  %v600_v22 = vrot.slane %v1381_v39, %v1500_v37  ;;  %v604_v17 = vrot.slane %v1394_v44, %v1314_v18 }
  0x21   :  { %v608_v16 = vrot.slane %v1394_v44, %v1500_v37  ;;  %v1588_v8 = vrot.slane %v484_v48, %v1314_v18  ;;  %v1591_v5 = vrot.slane %v488_v53, %v1314_v18  ;;  %v1594_v4 = vrot.slane %v492_v49, %v1314_v18 }
  0x22   :  { %v1597_v3 = vrot.slane %v496_v7, %v1314_v18  ;;  %v1600_v2 = vrot.slane %v500_v50, %v1314_v18  ;;  %v1603_v1 = vrot.slane %v504_v56, %v1314_v18  ;;  %v1606_v37 = vrot.slane %v508_v51, %v1314_v18 }
  0x23   :  { %2453 = vst [vmem:[#allocation28_spill] sm:$0xff] %v1588_v8  ;;  %2454 = vst [vmem:[#allocation29_spill] sm:$0xff] %v1591_v5  ;;  %v1609_v48 = vrot.slane %v512_v57, %v1314_v18  ;;  %v1612_v53 = vrot.slane %v516_v52, %v1314_v18  ;;  %v1615_v49 = vrot.slane %v520_v58, %v1314_v18  ;;  %v2541_v5 = vld [vmem:[#allocation15_spill] sm:$0xff]  ;;  %v2542_v8 = vld [vmem:[#allocation16_spill] sm:$0xff] }
  0x24   :  { %2455 = vst [vmem:[#allocation30_spill] sm:$0xff] %v1594_v4  ;;  %2456 = vst [vmem:[#allocation31_spill] sm:$0xff] %v1597_v3  ;;  %v1618_v7 = vrot.slane %v524_v54, %v1314_v18  ;;  %v1621_v50 = vrot.slane %v528_v47, %v1314_v18  ;;  %v1624_v56 = vrot.slane %v532_v55, %v1314_v18  ;;  %v2539_v3 = vld [vmem:[#allocation13_spill] sm:$0xff]  ;;  %v2540_v4 = vld [vmem:[#allocation14_spill] sm:$0xff] }
  0x25   :  { %2457 = vst [vmem:[#allocation32_spill] sm:$0xff] %v1600_v2  ;;  %2458 = vst [vmem:[#allocation33_spill] sm:$0xff] %v1603_v1  ;;  %v1627_v51 = vrot.slane %v536_v46, %v1314_v18  ;;  %v1630_v57 = vrot.slane %v540_v45, %v1314_v18  ;;  %v1633_v52 = vrot.slane %v544_v43, %v1314_v18  ;;  %v2537_v1 = vld [vmem:[#allocation11_spill] sm:$0xff]  ;;  %v2538_v2 = vld [vmem:[#allocation12_spill] sm:$0xff] }
  0x26   :  { %2459 = vst [vmem:[#allocation34_spill] sm:$0xff] %v1606_v37  ;;  %2460 = vst [vmem:[#allocation35_spill] sm:$0xff] %v1609_v48  ;;  %v1636_v58 = vrot.slane %v548_v42, %v1314_v18  ;;  %v1639_v54 = vrot.slane %v552_v41, %v1314_v18  ;;  %v1642_v47 = vrot.slane %v556_v40, %v1314_v18  ;;  %v1660_v41 = vsub.s32 6, %v1266_v6  ;;  %v2535_v48 = vld [vmem:[#allocation9_spill] sm:$0xff]  ;;  %v2536_v37 = vld [vmem:[#allocation10_spill] sm:$0xff] }
  0x27   :  { %2461 = vst [vmem:[#allocation36_spill] sm:$0xff] %v1612_v53  ;;  %2462 = vst [vmem:[#allocation37_spill] sm:$0xff] %v1615_v49  ;;  %v1645_v55 = vrot.slane %v560_v36, %v1314_v18  ;;  %v1648_v46 = vrot.slane %v564_v35, %v1314_v18  ;;  %v1651_v45 = vrot.slane %v568_v34, %v1314_v18  ;;  %v2533_v49 = vld [vmem:[#allocation7_spill] sm:$0xff]  ;;  %v2534_v53 = vld [vmem:[#allocation8_spill] sm:$0xff] }
  0x28   :  { %2463 = vst [vmem:[#allocation38_spill] sm:$0xff] %v1618_v7  ;;  %2464 = vst [vmem:[#allocation39_spill] sm:$0xff] %v1621_v50  ;;  %v1654_v43 = vrot.slane %v572_v31, %v1314_v18  ;;  %v1657_v42 = vrot.slane %v576_v30, %v1314_v18  ;;  %v1663_v40 = vrot.slane %v580_v29, %v1314_v18  ;;  %v2532_v7 = vld [vmem:[#allocation6_spill] sm:$0xff] }
  0x29   :  { %2465 = vst [vmem:[#allocation40_spill] sm:$0xff] %v1624_v56  ;;  %2466 = vst [vmem:[#allocation41_spill] sm:$0xff] %v1627_v51  ;;  %v1666_v36 = vrot.slane %v584_v28, %v1314_v18  ;;  %v1669_v35 = vrot.slane %v588_v25, %v1314_v18  ;;  %v1672_v34 = vrot.slane %v592_v24, %v1314_v18 }
  0x2a   :  { %2467 = vst [vmem:[#allocation42_spill] sm:$0xff] %v1630_v57  ;;  %2468 = vst [vmem:[#allocation43_spill] sm:$0xff] %v1633_v52  ;;  %v1675_v31 = vrot.slane %v596_v23, %v1314_v18  ;;  %v1678_v30 = vrot.slane %v600_v22, %v1314_v18  ;;  %v1681_v6 = vrot.slane %v604_v17, %v1314_v18 }
  0x2b   :  { %2469 = vst [vmem:[#allocation44_spill] sm:$0xff] %v1636_v58  ;;  %2470 = vst [vmem:[#allocation45_spill] sm:$0xff] %v1639_v54  ;;  %v1684_v29 = vrot.slane %v608_v16, %v1314_v18  ;;  %v840_v28 = vrot.slane %v1277_v9, %v1317_v19  ;;  %v848_v25 = vrot.slane %v1282_v10, %v1317_v19 }
  0x2c   :  { %2471 = vst [vmem:[#allocation46_spill] sm:$0xff] %v1642_v47  ;;  %2472 = vst [vmem:[#allocation47_spill] sm:$0xff] %v1645_v55  ;;  %v856_v24 = vrot.slane %v1287_v11, %v1317_v19  ;;  %v864_v23 = vrot.slane %v1292_v12, %v1317_v19  ;;  %v844_v22 = vrot.slane %v1277_v9, %v1660_v41 }
  0x2d   :  { %2473 = vst [vmem:[#allocation48_spill] sm:$0xff] %v1648_v46  ;;  %2474 = vst [vmem:[#allocation49_spill] sm:$0xff] %v1651_v45  ;;  %v852_v17 = vrot.slane %v1282_v10, %v1660_v41  ;;  %v872_v18 = vrot.slane %v1297_v13, %v1317_v19  ;;  %v880_v16 = vrot.slane %v1302_v14, %v1317_v19 }
  0x2e   :  { %2475 = vst [vmem:[#allocation50_spill] sm:$0xff] %v1654_v43  ;;  %2476 = vst [vmem:[#allocation51_spill] sm:$0xff] %v1657_v42  ;;  %v884_v9 = vrot.slane %v1302_v14, %v1660_v41  ;;  %v888_v10 = vrot.slane %v1307_v15, %v1317_v19  ;;  %v912_v14 = vrot.slane %v1340_v26, %v1317_v19 }
  0x2f   :  { %2477 = vst [vmem:[#allocation52_spill] sm:$0xff] %v1663_v40  ;;  %2478 = vst [vmem:[#allocation53_spill] sm:$0xff] %v1666_v36  ;;  %v924_v36 = vrot.slane %v1345_v27, %v1660_v41  ;;  %v932_v40 = vrot.slane %v1358_v32, %v1660_v41  ;;  %v940_v42 = vrot.slane %v1363_v33, %v1660_v41 }
  0x30   :  { %2479 = vst [vmem:[#allocation54_spill] sm:$0xff] %v1669_v35  ;;  %2480 = vst [vmem:[#allocation55_spill] sm:$0xff] %v1672_v34  ;;  %v896_v34 = vrot.slane %v1322_v20, %v1317_v19  ;;  %v916_v35 = vrot.slane %v1340_v26, %v1660_v41  ;;  %v944_v26 = vrot.slane %v1376_v38, %v1317_v19 }
  0x31   :  { %2481 = vst [vmem:[#allocation56_spill] sm:$0xff] %v1675_v31  ;;  %2482 = vst [vmem:[#allocation57_spill] sm:$0xff] %v1678_v30  ;;  %v876_v30 = vrot.slane %v1297_v13, %v1660_v41  ;;  %v892_v31 = vrot.slane %v1307_v15, %v1660_v41  ;;  %v908_v13 = vrot.slane %v1327_v21, %v1660_v41 }
  0x32   :  { %2483 = vst [vmem:[#allocation58_spill] sm:$0xff] %v1681_v6  ;;  %2484 = vst [vmem:[#allocation59_spill] sm:$0xff] %v1684_v29  ;;  %v860_v29 = vrot.slane %v1287_v11, %v1660_v41  ;;  %v868_v6 = vrot.slane %v1292_v12, %v1660_v41  ;;  %v900_v11 = vrot.slane %v1322_v20, %v1660_v41 }
  0x33   :  { %v904_v12 = vrot.slane %v1327_v21, %v1317_v19  ;;  %v920_v15 = vrot.slane %v1345_v27, %v1317_v19  ;;  %v928_v20 = vrot.slane %v1358_v32, %v1317_v19  ;;  %v936_v21 = vrot.slane %v1363_v33, %v1317_v19 }
  0x34   :  { %v948_v43 = vrot.slane %v1376_v38, %v1660_v41  ;;  %v952_v27 = vrot.slane %v1381_v39, %v1317_v19  ;;  %v956_v45 = vrot.slane %v1381_v39, %v1660_v41  ;;  %v960_v32 = vrot.slane %v1394_v44, %v1317_v19 }
  0x35   :  { %v964_v46 = vrot.slane %v1394_v44, %v1660_v41  ;;  %v1751_v33 = vrot.slane %v840_v28, %v1317_v19  ;;  %v1754_v55 = vrot.slane %v844_v22, %v1317_v19  ;;  %v1757_v38 = vrot.slane %v848_v25, %v1317_v19 }
  0x36   :  { %v1760_v47 = vrot.slane %v852_v17, %v1317_v19  ;;  %v1763_v39 = vrot.slane %v856_v24, %v1317_v19  ;;  %v1766_v54 = vrot.slane %v860_v29, %v1317_v19  ;;  %v1769_v44 = vrot.slane %v864_v23, %v1317_v19  ;;  %v34_v29 = vld [vmem:[%s2425_s3] sm:$0xff]  ;;  %v36_v23 = vld [vmem:[%s2425_s3 + $0x10] sm:$0xff] }
  0x37   :  { %2485 = vst [vmem:[#allocation60_spill] sm:$0xff] %v1751_v33  ;;  %2486 = vst [vmem:[#allocation61_spill] sm:$0xff] %v1754_v55  ;;  %v1772_v41 = vrot.slane %v868_v6, %v1317_v19  ;;  %v1775_v28 = vrot.slane %v872_v18, %v1317_v19  ;;  %v1778_v25 = vrot.slane %v876_v30, %v1317_v19  ;;  %v35_v6 = vld [vmem:[%s2425_s3 + $0x8] sm:$0xff]  ;;  %v37_v30 = vld [vmem:[%s2425_s3 + $0x18] sm:$0xff] }
  0x38   :  { %2487 = vst [vmem:[#allocation62_spill] sm:$0xff] %v1757_v38  ;;  %2488 = vst [vmem:[#allocation63_spill] sm:$0xff] %v1760_v47  ;;  %v1781_v22 = vrot.slane %v880_v16, %v1317_v19  ;;  %v1784_v24 = vrot.slane %v884_v9, %v1317_v19  ;;  %v1799_v17 = vrot.slane %v888_v10, %v1317_v19  ;;  %v40_v10 = vld [vmem:[%s2425_s3 + $0x30] sm:$0xff] }
  0x39   :  { %2489 = vst [vmem:[#allocation64_spill] sm:$0xff] %v1763_v39  ;;  %2490 = vst [vmem:[#allocation65_spill] sm:$0xff] %v1766_v54  ;;  %v1802_v18 = vrot.slane %v892_v31, %v1317_v19  ;;  %v1805_v16 = vrot.slane %v896_v34, %v1317_v19  ;;  %v1808_v9 = vrot.slane %v900_v11, %v1317_v19  ;;  %v41_v34 = vld [vmem:[%s2425_s3 + $0x38] sm:$0xff]  ;;  %v64_v54 = vld [vmem:[%s2425_s3 + $0xf0] sm:$0xff] }
  0x3a   :  { %2491 = vst [vmem:[#allocation66_spill] sm:$0xff] %v1769_v44  ;;  %2492 = vst [vmem:[#allocation67_spill] sm:$0xff] %v1772_v41  ;;  %v1823_v31 = vrot.slane %v904_v12, %v1317_v19  ;;  %v1826_v11 = vrot.slane %v908_v13, %v1317_v19  ;;  %v44_v12 = vld [vmem:[%s2425_s3 + $0x50] sm:$0xff]  ;;  %v1844_v13 = vrot.slane %v920_v15, %v1317_v19  ;;  %v47_v15 = vld [vmem:[%s2425_s3 + $0x68] sm:$0xff] }
  0x3b   :  { %2493 = vst [vmem:[#allocation68_spill] sm:$0xff] %v1775_v28  ;;  %2494 = vst [vmem:[#allocation69_spill] sm:$0xff] %v1778_v25  ;;  %v60_v25 = vld [vmem:[%s2425_s3 + $0xd0] sm:$0xff]  ;;  %v61_v28 = vld [vmem:[%s2425_s3 + $0xd8] sm:$0xff] }
  0x3c   :  { %2495 = vst [vmem:[#allocation70_spill] sm:$0xff] %v1781_v22  ;;  %2496 = vst [vmem:[#allocation71_spill] sm:$0xff] %v1784_v24  ;;  %v38_v24 = vld [vmem:[%s2425_s3 + $0x20] sm:$0xff]  ;;  %v39_v22 = vld [vmem:[%s2425_s3 + $0x28] sm:$0xff] }
  0x3d   :  { %2497 = vst [vmem:[#allocation72_spill] sm:$0xff] %v1799_v17  ;;  %2498 = vst [vmem:[#allocation73_spill] sm:$0xff] %v1802_v18  ;;  %v42_v18 = vld [vmem:[%s2425_s3 + $0x40] sm:$0xff]  ;;  %v43_v17 = vld [vmem:[%s2425_s3 + $0x48] sm:$0xff] }
  0x3e   :  { %2499 = vst [vmem:[#allocation74_spill] sm:$0xff] %v1805_v16  ;;  %2500 = vst [vmem:[#allocation75_spill] sm:$0xff] %v1808_v9  ;;  %v1829_v9 = vrot.slane %v912_v14, %v1317_v19  ;;  %v1832_v16 = vrot.slane %v916_v35, %v1317_v19  ;;  %v1847_v14 = vrot.slane %v924_v36, %v1317_v19  ;;  %v62_v41 = vld [vmem:[%s2425_s3 + $0xe0] sm:$0xff]  ;;  %v63_v44 = vld [vmem:[%s2425_s3 + $0xe8] sm:$0xff] }
  0x3f   :  { %2501 = vst [vmem:[#allocation76_spill] sm:$0xff] %v1823_v31  ;;  %2502 = vst [vmem:[#allocation77_spill] sm:$0xff] %v1826_v11  ;;  %v1850_v35 = vrot.slane %v928_v20, %v1317_v19  ;;  %v46_v11 = vld [vmem:[%s2425_s3 + $0x60] sm:$0xff]  ;;  %v1865_v36 = vrot.slane %v936_v21, %v1317_v19  ;;  %v1868_v20 = vrot.slane %v940_v42, %v1317_v19  ;;  %v59_v31 = vld [vmem:[%s2425_s3 + $0xc8] sm:$0xff] }
  0x40   :  { %2503 = vst [vmem:[#allocation78_spill] sm:$0xff] %v1829_v9  ;;  %2504 = vst [vmem:[#allocation79_spill] sm:$0xff] %v1832_v16  ;;  %v1853_v16 = vrot.slane %v932_v40, %v1317_v19  ;;  %v45_v9 = vld [vmem:[%s2425_s3 + $0x58] sm:$0xff]  ;;  %v1871_v40 = vrot.slane %v944_v26, %v1317_v19  ;;  %v50_v42 = vld [vmem:[%s2425_s3 + $0x80] sm:$0xff]  ;;  %v1886_v21 = vrot.slane %v952_v27, %v1317_v19 }
  0x41   :  { %2505 = vst [vmem:[#allocation80_spill] sm:$0xff] %v1844_v13  ;;  %2506 = vst [vmem:[#allocation81_spill] sm:$0xff] %v1847_v14  ;;  %v48_v14 = vld [vmem:[%s2425_s3 + $0x70] sm:$0xff]  ;;  %v49_v13 = vld [vmem:[%s2425_s3 + $0x78] sm:$0xff]  ;;  %v1889_v26 = vrot.slane %v956_v45, %v1317_v19 }
  0x42   :  { %2507 = vst [vmem:[#allocation82_spill] sm:$0xff] %v1850_v35  ;;  %2508 = vst [vmem:[#allocation83_spill] sm:$0xff] %v1853_v16  ;;  %v1874_v16 = vrot.slane %v948_v43, %v1317_v19  ;;  %v1892_v43 = vrot.slane %v960_v32, %v1317_v19  ;;  %v53_v27 = vld [vmem:[%s2425_s3 + $0x98] sm:$0xff] }
  0x43   :  { %2509 = vst [vmem:[#allocation84_spill] sm:$0xff] %v1865_v36  ;;  %2510 = vst [vmem:[#allocation85_spill] sm:$0xff] %v1868_v20  ;;  %v52_v20 = vld [vmem:[%s2425_s3 + $0x90] sm:$0xff]  ;;  %v58_v36 = vld [vmem:[%s2425_s3 + $0xc0] sm:$0xff] }
  0x44   :  { %2511 = vst [vmem:[#allocation86_spill] sm:$0xff] %v1871_v40  ;;  %2512 = vst [vmem:[#allocation87_spill] sm:$0xff] %v1874_v16  ;;  %v1895_v16 = vrot.slane %v964_v46, %v1317_v19  ;;  %v51_v40 = vld [vmem:[%s2425_s3 + $0x88] sm:$0xff]  ;;  %v54_v46 = vld [vmem:[%s2425_s3 + $0xa0] sm:$0xff] }
  0x45   :  { %2513 = vst [vmem:[#allocation88_spill] sm:$0xff] %v1886_v21  ;;  %2514 = vst [vmem:[#allocation89_spill] sm:$0xff] %v1889_v26  ;;  %v57_v21 = vld [vmem:[%s2425_s3 + $0xb8] sm:$0xff] }
  0x46   :  { %2515 = vst [vmem:[#allocation90_spill] sm:$0xff] %v1892_v43  ;;  %2516 = vst [vmem:[#allocation91_spill] sm:$0xff] %v1895_v16  ;;  %v55_v16 = vld [vmem:[%s2425_s3 + $0xa8] sm:$0xff]  ;;  %v56_v43 = vld [vmem:[%s2425_s3 + $0xb0] sm:$0xff] }
  0x47   :  { %v65_v39 = vld [vmem:[%s2425_s3 + $0xf8] sm:$0xff] }
  0x81   :  { %v70_v35 = vpop.permute.xlu0 %69 }
  0x82   :  { %v1906_v45 = vadd.f32 %v70_v35, %v34_v29  ;;  %v1908_v26 = vadd.f32 %v70_v35, %v35_v6  ;;  %v1910_v32 = vadd.f32 %v70_v35, %v36_v23  ;;  %v1912_v19 = vadd.f32 %v70_v35, %v37_v30 }
  0x83   :  { %v1923_v29 = vadd.f32 %v70_v35, %v38_v24  ;;  %v1925_v6 = vadd.f32 %v70_v35, %v39_v22  ;;  %v1927_v23 = vadd.f32 %v70_v35, %v40_v10  ;;  %v1929_v30 = vadd.f32 %v70_v35, %v41_v34 }
  0x84   :  { %v1940_v24 = vadd.f32 %v70_v35, %v42_v18  ;;  %v1942_v22 = vadd.f32 %v70_v35, %v43_v17  ;;  %v1944_v10 = vadd.f32 %v70_v35, %v44_v12  ;;  %v1946_v34 = vadd.f32 %v70_v35, %v45_v9 }
  0x85   :  { %v1957_v18 = vadd.f32 %v70_v35, %v46_v11  ;;  %v1959_v17 = vadd.f32 %v70_v35, %v47_v15  ;;  %v1961_v12 = vadd.f32 %v70_v35, %v48_v14  ;;  %v1963_v9 = vadd.f32 %v70_v35, %v49_v13  ;;  %v107_v58 = vpop.permute.xlu0 %106 }
  0x86   :  { %v1974_v11 = vadd.f32 %v70_v35, %v50_v42  ;;  %v1976_v15 = vadd.f32 %v70_v35, %v51_v40  ;;  %v1978_v14 = vadd.f32 %v70_v35, %v52_v20  ;;  %v1980_v13 = vadd.f32 %v70_v35, %v53_v27 }
  0x87   :  { %v1982_v47 = vadd.f32 %v70_v35, %v54_v46  ;;  %v1984_v38 = vadd.f32 %v70_v35, %v55_v16  ;;  %v1986_v55 = vadd.f32 %v70_v35, %v56_v43  ;;  %v1988_v33 = vadd.f32 %v70_v35, %v57_v21 }
  0x88   :  { %v1990_v52 = vadd.f32 %v70_v35, %v58_v36  ;;  %v1992_v57 = vadd.f32 %v70_v35, %v59_v31  ;;  %v1994_v42 = vadd.f32 %v70_v35, %v60_v25  ;;  %v1996_v40 = vadd.f32 %v70_v35, %v61_v28 }
  0x89   :  { %2517 = vst [vmem:[#allocation92_spill] sm:$0xff] %v1984_v38  ;;  %2518 = vst [vmem:[#allocation93_spill] sm:$0xff] %v1986_v55  ;;  %v1998_v20 = vadd.f32 %v70_v35, %v62_v41  ;;  %v2000_v27 = vadd.f32 %v70_v35, %v63_v44  ;;  %v2002_v46 = vadd.f32 %v70_v35, %v64_v54  ;;  %v2528_v41 = vld [vmem:[#allocation2_spill] sm:$0xff]  ;;  %v2529_v44 = vld [vmem:[#allocation3_spill] sm:$0xff] }
  0x8a   :  { %2519 = vst [vmem:[#allocation94_spill] sm:$0xff] %v1988_v33  ;;  %2520 = vst [vmem:[#allocation95_spill] sm:$0xff] %v1990_v52  ;;  %v2004_v16 = vadd.f32 %v70_v35, %v65_v39  ;;  %v413_v21 = vmul.f32 %v1425_v59, %v107_v58  ;;  %v414_v43 = vmul.f32 %v1428_v60, %v107_v58  ;;  %v2530_v54 = vld [vmem:[#allocation4_spill] sm:$0xff]  ;;  %v2531_v39 = vld [vmem:[#allocation5_spill] sm:$0xff] }
  0x8b   :  { %2521 = vst [vmem:[#allocation96_spill] sm:$0xff] %v1992_v57  ;;  %2522 = vst [vmem:[#allocation97_spill] sm:$0xff] %v1994_v42  ;;  %v415_v36 = vmul.f32 %v1431_v61, %v107_v58  ;;  %v416_v31 = vmul.f32 %v1434_v62, %v107_v58  ;;  %v417_v25 = vmul.f32 %v1437_v63, %v107_v58  ;;  %v2548_v42 = vld [vmem:[#allocation22_spill] sm:$0xff]  ;;  %v2549_v57 = vld [vmem:[#allocation23_spill] sm:$0xff] }
  0x8c   :  { %2523 = vst [vmem:[#allocation98_spill] sm:$0xff] %v1996_v40  ;;  %2524 = vst [vmem:[#allocation99_spill] sm:$0xff] %v1998_v20  ;;  %v418_v28 = vmul.f32 %v1440_v0, %v107_v58  ;;  %v419_v51 = vmul.f32 %v2528_v41, %v107_v58  ;;  %v420_v56 = vmul.f32 %v2529_v44, %v107_v58  ;;  %v2546_v20 = vld [vmem:[#allocation20_spill] sm:$0xff]  ;;  %v2547_v40 = vld [vmem:[#allocation21_spill] sm:$0xff] }
  0x8d   :  { %2525 = vst [vmem:[#allocation100_spill] sm:$0xff] %v2000_v27  ;;  %2526 = vst [vmem:[#allocation101_spill] sm:$0xff] %v2002_v46  ;;  %v421_v50 = vmul.f32 %v2530_v54, %v107_v58  ;;  %v422_v35 = vmul.f32 %v2531_v39, %v107_v58  ;;  %v423_v59 = vmul.f32 %v2532_v7, %v107_v58  ;;  %v2544_v46 = vld [vmem:[#allocation18_spill] sm:$0xff]  ;;  %v2545_v27 = vld [vmem:[#allocation19_spill] sm:$0xff] }
  0x8e   :  { %2527 = vst [vmem:[#allocation102_spill] sm:$0xff] %v2004_v16  ;;  %v424_v60 = vmul.f32 %v2533_v49, %v107_v58  ;;  %v425_v61 = vmul.f32 %v2534_v53, %v107_v58  ;;  %v426_v62 = vmul.f32 %v2535_v48, %v107_v58  ;;  %v427_v63 = vmul.f32 %v2536_v37, %v107_v58  ;;  %v2543_v16 = vld [vmem:[#allocation17_spill] sm:$0xff]  ;;  %v2550_v52 = vld [vmem:[#allocation24_spill] sm:$0xff]  ;;  %v2552_v55 = vld [vmem:[#allocation26_spill] sm:$0xff] }
  0x8f   :  { %v428_v0 = vmul.f32 %v2537_v1, %v107_v58  ;;  %v429_v41 = vmul.f32 %v2538_v2, %v107_v58  ;;  %v430_v44 = vmul.f32 %v2539_v3, %v107_v58  ;;  %v431_v54 = vmul.f32 %v2540_v4, %v107_v58  ;;  %v2551_v33 = vld [vmem:[#allocation25_spill] sm:$0xff]  ;;  %v2553_v38 = vld [vmem:[#allocation27_spill] sm:$0xff] }
  0x90   :  { %v432_v39 = vmul.f32 %v2541_v5, %v107_v58  ;;  %v433_v7 = vmul.f32 %v2542_v8, %v107_v58  ;;  %v434_v49 = vmul.f32 %v2543_v16, %v107_v58  ;;  %v435_v53 = vmul.f32 %v2544_v46, %v107_v58 }
  0x91   :  { %v436_v48 = vmul.f32 %v2545_v27, %v107_v58  ;;  %v437_v37 = vmul.f32 %v2546_v20, %v107_v58  ;;  %v438_v1 = vmul.f32 %v2547_v40, %v107_v58  ;;  %v439_v2 = vmul.f32 %v2548_v42, %v107_v58 }
  0x92   :  { %v440_v3 = vmul.f32 %v2549_v57, %v107_v58  ;;  %v441_v4 = vmul.f32 %v2550_v52, %v107_v58  ;;  %v442_v5 = vmul.f32 %v2551_v33, %v107_v58  ;;  %v443_v8 = vmul.f32 %v2552_v55, %v107_v58 }
  0x93   :  { %v444_v16 = vmul.f32 %v2553_v38, %v107_v58  ;;  %v2039_v46 = vadd.f32 %v413_v21, %v1906_v45  ;;  %v2042_v27 = vadd.f32 %v414_v43, %v1908_v26  ;;  %v2045_v40 = vadd.f32 %v415_v36, %v1910_v32  ;;  %v2568_v43 = vld [vmem:[#allocation99_spill] sm:$0xff] }
  0x94   :  { %v2048_v42 = vadd.f32 %v416_v31, %v1912_v19  ;;  %v2051_v57 = vadd.f32 %v417_v25, %v1923_v29  ;;  %v2054_v52 = vadd.f32 %v418_v28, %v1925_v6  ;;  %v2057_v58 = vadd.f32 %v419_v51, %v1927_v23  ;;  %v2570_v31 = vld [vmem:[#allocation100_spill] sm:$0xff]  ;;  %v2572_v28 = vld [vmem:[#allocation101_spill] sm:$0xff] }
  0x95   :  { %v2060_v55 = vadd.f32 %v420_v56, %v1929_v30  ;;  %v2063_v33 = vadd.f32 %v421_v50, %v1940_v24  ;;  %v2066_v38 = vadd.f32 %v422_v35, %v1942_v22  ;;  %v2069_v26 = vadd.f32 %v423_v59, %v1944_v10  ;;  %v479_v30 = vpop.permute.xlu1 %478  ;;  %v2554_v22 = vld [vmem:[#allocation92_spill] sm:$0xff]  ;;  %v2574_v59 = vld [vmem:[#allocation102_spill] sm:$0xff] }
  0x96   :  { %v2072_v45 = vadd.f32 %v424_v60, %v1946_v34  ;;  %v2075_v32 = vadd.f32 %v425_v61, %v1957_v18  ;;  %v2078_v51 = vadd.f32 %v426_v62, %v1959_v17  ;;  %v2081_v56 = vadd.f32 %v427_v63, %v1961_v12  ;;  %v2556_v34 = vld [vmem:[#allocation93_spill] sm:$0xff]  ;;  %v2558_v17 = vld [vmem:[#allocation94_spill] sm:$0xff]  ;;  %v2576_v61 = vld [vmem:[#allocation28_spill] sm:$0xff] }
  0x97   :  { %v2084_v50 = vadd.f32 %v428_v0, %v1963_v9  ;;  %v2087_v19 = vadd.f32 %v429_v41, %v1974_v11  ;;  %v2090_v29 = vadd.f32 %v430_v44, %v1976_v15  ;;  %v2093_v6 = vadd.f32 %v431_v54, %v1978_v14  ;;  %v2560_v9 = vld [vmem:[#allocation95_spill] sm:$0xff]  ;;  %v2562_v15 = vld [vmem:[#allocation96_spill] sm:$0xff]  ;;  %v2577_v63 = vld [vmem:[#allocation29_spill] sm:$0xff] }
  0x98   :  { %v2096_v23 = vadd.f32 %v432_v39, %v1980_v13  ;;  %v2099_v24 = vadd.f32 %v433_v7, %v1982_v47  ;;  %v2102_v10 = vadd.f32 %v434_v49, %v2554_v22  ;;  %v2105_v18 = vadd.f32 %v435_v53, %v2556_v34  ;;  %v2564_v13 = vld [vmem:[#allocation97_spill] sm:$0xff]  ;;  %v2566_v47 = vld [vmem:[#allocation98_spill] sm:$0xff]  ;;  %v2579_v54 = vld [vmem:[#allocation31_spill] sm:$0xff] }
  0x99   :  { %v2108_v12 = vadd.f32 %v436_v48, %v2558_v17  ;;  %v2111_v11 = vadd.f32 %v437_v37, %v2560_v9  ;;  %v2114_v14 = vadd.f32 %v438_v1, %v2562_v15  ;;  %v2117_v20 = vadd.f32 %v439_v2, %v2564_v13  ;;  %v2578_v41 = vld [vmem:[#allocation30_spill] sm:$0xff]  ;;  %v2580_v7 = vld [vmem:[#allocation32_spill] sm:$0xff]  ;;  %v2581_v53 = vld [vmem:[#allocation33_spill] sm:$0xff] }
  0x9a   :  { %2555 = vst [vmem:[#allocation2_spill] sm:$0xff] %v2102_v10  ;;  %2557 = vst [vmem:[#allocation3_spill] sm:$0xff] %v2105_v18  ;;  %v2120_v21 = vadd.f32 %v440_v3, %v2566_v47  ;;  %v2123_v36 = vadd.f32 %v441_v4, %v2568_v43  ;;  %v2126_v25 = vadd.f32 %v442_v5, %v2570_v31  ;;  %v2582_v37 = vld [vmem:[#allocation34_spill] sm:$0xff]  ;;  %v2583_v2 = vld [vmem:[#allocation35_spill] sm:$0xff] }
  0x9b   :  { %2559 = vst [vmem:[#allocation4_spill] sm:$0xff] %v2108_v12  ;;  %2561 = vst [vmem:[#allocation5_spill] sm:$0xff] %v2111_v11  ;;  %v2129_v35 = vadd.f32 %v443_v8, %v2572_v28  ;;  %v2132_v60 = vadd.f32 %v444_v16, %v2574_v59  ;;  %v769_v62 = vmul.f32 %v2576_v61, %v479_v30  ;;  %v2584_v4 = vld [vmem:[#allocation36_spill] sm:$0xff]  ;;  %v2585_v8 = vld [vmem:[#allocation37_spill] sm:$0xff] }
  0x9c   :  { %2563 = vst [vmem:[#allocation6_spill] sm:$0xff] %v2114_v14  ;;  %2565 = vst [vmem:[#allocation7_spill] sm:$0xff] %v2117_v20  ;;  %v770_v0 = vmul.f32 %v2577_v63, %v479_v30  ;;  %v771_v44 = vmul.f32 %v2578_v41, %v479_v30  ;;  %v772_v39 = vmul.f32 %v2579_v54, %v479_v30  ;;  %v2586_v22 = vld [vmem:[#allocation38_spill] sm:$0xff]  ;;  %v2587_v17 = vld [vmem:[#allocation39_spill] sm:$0xff] }
  0x9d   :  { %2567 = vst [vmem:[#allocation8_spill] sm:$0xff] %v2120_v21  ;;  %2569 = vst [vmem:[#allocation9_spill] sm:$0xff] %v2123_v36  ;;  %v773_v49 = vmul.f32 %v2580_v7, %v479_v30  ;;  %v774_v48 = vmul.f32 %v2581_v53, %v479_v30  ;;  %v775_v1 = vmul.f32 %v2582_v37, %v479_v30  ;;  %v2588_v15 = vld [vmem:[#allocation40_spill] sm:$0xff]  ;;  %v2589_v47 = vld [vmem:[#allocation41_spill] sm:$0xff] }
  0x9e   :  { %2571 = vst [vmem:[#allocation10_spill] sm:$0xff] %v2126_v25  ;;  %2573 = vst [vmem:[#allocation11_spill] sm:$0xff] %v2129_v35  ;;  %v776_v3 = vmul.f32 %v2583_v2, %v479_v30  ;;  %v777_v5 = vmul.f32 %v2584_v4, %v479_v30  ;;  %v778_v16 = vmul.f32 %v2585_v8, %v479_v30  ;;  %v2590_v31 = vld [vmem:[#allocation42_spill] sm:$0xff]  ;;  %v2591_v59 = vld [vmem:[#allocation43_spill] sm:$0xff] }
  0x9f   :  { %2575 = vst [vmem:[#allocation12_spill] sm:$0xff] %v2132_v60  ;;  %v779_v34 = vmul.f32 %v2586_v22, %v479_v30  ;;  %v780_v9 = vmul.f32 %v2587_v17, %v479_v30  ;;  %v781_v13 = vmul.f32 %v2588_v15, %v479_v30  ;;  %v782_v43 = vmul.f32 %v2589_v47, %v479_v30  ;;  %v2592_v63 = vld [vmem:[#allocation44_spill] sm:$0xff]  ;;  %v2593_v54 = vld [vmem:[#allocation45_spill] sm:$0xff]  ;;  %v2594_v53 = vld [vmem:[#allocation46_spill] sm:$0xff] }
  0xa0   :  { %v783_v28 = vmul.f32 %v2590_v31, %v479_v30  ;;  %v784_v61 = vmul.f32 %v2591_v59, %v479_v30  ;;  %v785_v41 = vmul.f32 %v2592_v63, %v479_v30  ;;  %v786_v7 = vmul.f32 %v2593_v54, %v479_v30  ;;  %v2595_v2 = vld [vmem:[#allocation47_spill] sm:$0xff]  ;;  %v2596_v8 = vld [vmem:[#allocation48_spill] sm:$0xff]  ;;  %v2597_v60 = vld [vmem:[#allocation49_spill] sm:$0xff] }
  0xa1   :  { %v787_v37 = vmul.f32 %v2594_v53, %v479_v30  ;;  %v788_v4 = vmul.f32 %v2595_v2, %v479_v30  ;;  %v789_v22 = vmul.f32 %v2596_v8, %v479_v30  ;;  %v790_v17 = vmul.f32 %v2597_v60, %v479_v30  ;;  %v2598_v35 = vld [vmem:[#allocation50_spill] sm:$0xff]  ;;  %v2599_v25 = vld [vmem:[#allocation51_spill] sm:$0xff]  ;;  %v2600_v36 = vld [vmem:[#allocation52_spill] sm:$0xff] }
  0xa2   :  { %v791_v15 = vmul.f32 %v2598_v35, %v479_v30  ;;  %v792_v47 = vmul.f32 %v2599_v25, %v479_v30  ;;  %v793_v31 = vmul.f32 %v2600_v36, %v479_v30  ;;  %v2601_v21 = vld [vmem:[#allocation53_spill] sm:$0xff]  ;;  %v2602_v20 = vld [vmem:[#allocation54_spill] sm:$0xff]  ;;  %v2603_v14 = vld [vmem:[#allocation55_spill] sm:$0xff]  ;;  %v2167_v35 = vadd.f32 %v769_v62, %v2039_v46 }
  0xa3   :  { %v794_v59 = vmul.f32 %v2601_v21, %v479_v30  ;;  %v795_v63 = vmul.f32 %v2602_v20, %v479_v30  ;;  %v796_v54 = vmul.f32 %v2603_v14, %v479_v30  ;;  %v2604_v11 = vld [vmem:[#allocation56_spill] sm:$0xff]  ;;  %v2605_v12 = vld [vmem:[#allocation57_spill] sm:$0xff]  ;;  %v2606_v18 = vld [vmem:[#allocation58_spill] sm:$0xff]  ;;  %v2170_v25 = vadd.f32 %v770_v0, %v2042_v27 }
  0xa4   :  { %v797_v53 = vmul.f32 %v2604_v11, %v479_v30  ;;  %v798_v2 = vmul.f32 %v2605_v12, %v479_v30  ;;  %v799_v8 = vmul.f32 %v2606_v18, %v479_v30  ;;  %v2607_v10 = vld [vmem:[#allocation59_spill] sm:$0xff]  ;;  %v2173_v21 = vadd.f32 %v771_v44, %v2045_v40 }
  0xa5   :  { %v800_v60 = vmul.f32 %v2607_v10, %v479_v30  ;;  %v2176_v20 = vadd.f32 %v772_v39, %v2048_v42  ;;  %v2179_v11 = vadd.f32 %v773_v49, %v2051_v57  ;;  %v2182_v12 = vadd.f32 %v774_v48, %v2054_v52  ;;  %v2622_v49 = vld [vmem:[#allocation9_spill] sm:$0xff] }
  0xa6   :  { %v2185_v30 = vadd.f32 %v775_v1, %v2057_v58  ;;  %v2188_v46 = vadd.f32 %v776_v3, %v2060_v55  ;;  %v2191_v27 = vadd.f32 %v777_v5, %v2063_v33  ;;  %v2194_v40 = vadd.f32 %v778_v16, %v2066_v38  ;;  %v2624_v1 = vld [vmem:[#allocation10_spill] sm:$0xff]  ;;  %v2626_v5 = vld [vmem:[#allocation11_spill] sm:$0xff] }
  0xa7   :  { %v2197_v42 = vadd.f32 %v779_v34, %v2069_v26  ;;  %v2200_v57 = vadd.f32 %v780_v9, %v2072_v45  ;;  %v2203_v52 = vadd.f32 %v781_v13, %v2075_v32  ;;  %v2206_v58 = vadd.f32 %v782_v43, %v2078_v51  ;;  %v835_v51 = vpop.permute.xlu1 %834  ;;  %v2628_v34 = vld [vmem:[#allocation12_spill] sm:$0xff] }
  0xa8   :  { %v2209_v55 = vadd.f32 %v783_v28, %v2081_v56  ;;  %v2212_v33 = vadd.f32 %v784_v61, %v2084_v50  ;;  %v2215_v38 = vadd.f32 %v785_v41, %v2087_v19  ;;  %v2218_v26 = vadd.f32 %v786_v7, %v2090_v29  ;;  %v2608_v56 = vld [vmem:[#allocation2_spill] sm:$0xff]  ;;  %v2610_v50 = vld [vmem:[#allocation3_spill] sm:$0xff]  ;;  %v2612_v19 = vld [vmem:[#allocation4_spill] sm:$0xff] }
  0xa9   :  { %v2221_v45 = vadd.f32 %v787_v37, %v2093_v6  ;;  %v2224_v32 = vadd.f32 %v788_v4, %v2096_v23  ;;  %v2227_v10 = vadd.f32 %v789_v22, %v2099_v24  ;;  %v2230_v18 = vadd.f32 %v790_v17, %v2608_v56  ;;  %v2614_v29 = vld [vmem:[#allocation5_spill] sm:$0xff]  ;;  %v2616_v6 = vld [vmem:[#allocation6_spill] sm:$0xff]  ;;  %v2618_v23 = vld [vmem:[#allocation7_spill] sm:$0xff] }
  0xaa   :  { %v2233_v14 = vadd.f32 %v791_v15, %v2610_v50  ;;  %v2236_v36 = vadd.f32 %v792_v47, %v2612_v19  ;;  %v2239_v62 = vadd.f32 %v793_v31, %v2614_v29  ;;  %v2242_v0 = vadd.f32 %v794_v59, %v2616_v6  ;;  %v2620_v24 = vld [vmem:[#allocation8_spill] sm:$0xff]  ;;  %v2631_v28 = vld [vmem:[#allocation61_spill] sm:$0xff]  ;;  %v2632_v41 = vld [vmem:[#allocation62_spill] sm:$0xff] }
  0xab   :  { %2609 = vst [vmem:[#allocation13_spill] sm:$0xff] %v2230_v18  ;;  %v2245_v44 = vadd.f32 %v795_v63, %v2618_v23  ;;  %v2248_v39 = vadd.f32 %v796_v54, %v2620_v24  ;;  %v2251_v48 = vadd.f32 %v797_v53, %v2622_v49  ;;  %v2254_v3 = vadd.f32 %v798_v2, %v2624_v1  ;;  %v2630_v13 = vld [vmem:[#allocation60_spill] sm:$0xff]  ;;  %v2633_v37 = vld [vmem:[#allocation63_spill] sm:$0xff]  ;;  %v2635_v15 = vld [vmem:[#allocation65_spill] sm:$0xff] }
  0xac   :  { %2611 = vst [vmem:[#allocation14_spill] sm:$0xff] %v2233_v14  ;;  %2613 = vst [vmem:[#allocation15_spill] sm:$0xff] %v2236_v36  ;;  %v2257_v16 = vadd.f32 %v799_v8, %v2626_v5  ;;  %v2260_v9 = vadd.f32 %v800_v60, %v2628_v34  ;;  %v1125_v43 = vmul.f32 %v2630_v13, %v835_v51  ;;  %v2634_v22 = vld [vmem:[#allocation64_spill] sm:$0xff]  ;;  %v2636_v31 = vld [vmem:[#allocation66_spill] sm:$0xff] }
  0xad   :  { %2615 = vst [vmem:[#allocation16_spill] sm:$0xff] %v2239_v62  ;;  %2617 = vst [vmem:[#allocation17_spill] sm:$0xff] %v2242_v0  ;;  %v1126_v61 = vmul.f32 %v2631_v28, %v835_v51  ;;  %v1127_v7 = vmul.f32 %v2632_v41, %v835_v51  ;;  %v1128_v4 = vmul.f32 %v2633_v37, %v835_v51  ;;  %v2637_v63 = vld [vmem:[#allocation67_spill] sm:$0xff]  ;;  %v2638_v53 = vld [vmem:[#allocation68_spill] sm:$0xff] }
  0xae   :  { %2619 = vst [vmem:[#allocation18_spill] sm:$0xff] %v2245_v44  ;;  %2621 = vst [vmem:[#allocation19_spill] sm:$0xff] %v2248_v39  ;;  %v1129_v17 = vmul.f32 %v2634_v22, %v835_v51  ;;  %v1130_v47 = vmul.f32 %v2635_v15, %v835_v51  ;;  %v1131_v59 = vmul.f32 %v2636_v31, %v835_v51  ;;  %v2639_v8 = vld [vmem:[#allocation69_spill] sm:$0xff]  ;;  %v2640_v56 = vld [vmem:[#allocation70_spill] sm:$0xff] }
  0xaf   :  { %2623 = vst [vmem:[#allocation20_spill] sm:$0xff] %v2251_v48  ;;  %2625 = vst [vmem:[#allocation21_spill] sm:$0xff] %v2254_v3  ;;  %v1132_v54 = vmul.f32 %v2637_v63, %v835_v51  ;;  %v1133_v2 = vmul.f32 %v2638_v53, %v835_v51  ;;  %v1134_v60 = vmul.f32 %v2639_v8, %v835_v51  ;;  %v2641_v19 = vld [vmem:[#allocation71_spill] sm:$0xff]  ;;  %v2642_v6 = vld [vmem:[#allocation72_spill] sm:$0xff] }
  0xb0   :  { %2627 = vst [vmem:[#allocation22_spill] sm:$0xff] %v2257_v16  ;;  %2629 = vst [vmem:[#allocation23_spill] sm:$0xff] %v2260_v9  ;;  %v1135_v50 = vmul.f32 %v2640_v56, %v835_v51  ;;  %v1136_v29 = vmul.f32 %v2641_v19, %v835_v51  ;;  %v1137_v23 = vmul.f32 %v2642_v6, %v835_v51  ;;  %v2643_v24 = vld [vmem:[#allocation73_spill] sm:$0xff]  ;;  %v2644_v1 = vld [vmem:[#allocation74_spill] sm:$0xff] }
  0xb1   :  { %v1138_v49 = vmul.f32 %v2643_v24, %v835_v51  ;;  %v1139_v5 = vmul.f32 %v2644_v1, %v835_v51  ;;  %v2645_v34 = vld [vmem:[#allocation75_spill] sm:$0xff]  ;;  %v2646_v28 = vld [vmem:[#allocation76_spill] sm:$0xff]  ;;  %v2647_v37 = vld [vmem:[#allocation77_spill] sm:$0xff] }
  0xb2   :  { %v1140_v13 = vmul.f32 %v2645_v34, %v835_v51  ;;  %v1141_v41 = vmul.f32 %v2646_v28, %v835_v51  ;;  %v1142_v22 = vmul.f32 %v2647_v37, %v835_v51  ;;  %v2648_v15 = vld [vmem:[#allocation78_spill] sm:$0xff]  ;;  %v2649_v63 = vld [vmem:[#allocation79_spill] sm:$0xff]  ;;  %v2650_v8 = vld [vmem:[#allocation80_spill] sm:$0xff] }
  0xb3   :  { %v1143_v31 = vmul.f32 %v2648_v15, %v835_v51  ;;  %v1144_v53 = vmul.f32 %v2649_v63, %v835_v51  ;;  %v1145_v56 = vmul.f32 %v2650_v8, %v835_v51  ;;  %v2651_v9 = vld [vmem:[#allocation81_spill] sm:$0xff]  ;;  %v2652_v16 = vld [vmem:[#allocation82_spill] sm:$0xff]  ;;  %v2653_v3 = vld [vmem:[#allocation83_spill] sm:$0xff] }
  0xb4   :  { %v1146_v19 = vmul.f32 %v2651_v9, %v835_v51  ;;  %v1147_v6 = vmul.f32 %v2652_v16, %v835_v51  ;;  %v1148_v24 = vmul.f32 %v2653_v3, %v835_v51  ;;  %v2654_v48 = vld [vmem:[#allocation84_spill] sm:$0xff]  ;;  %v2655_v39 = vld [vmem:[#allocation85_spill] sm:$0xff]  ;;  %v2656_v44 = vld [vmem:[#allocation86_spill] sm:$0xff]  ;;  %v1157_v16 = vadd.f32 %v1125_v43, %v2167_v35 }
  0xb5   :  { %v1149_v1 = vmul.f32 %v2654_v48, %v835_v51  ;;  %v1150_v34 = vmul.f32 %v2655_v39, %v835_v51  ;;  %v1151_v28 = vmul.f32 %v2656_v44, %v835_v51  ;;  %v2657_v0 = vld [vmem:[#allocation87_spill] sm:$0xff]  ;;  %v2658_v62 = vld [vmem:[#allocation88_spill] sm:$0xff]  ;;  %v2659_v36 = vld [vmem:[#allocation89_spill] sm:$0xff]  ;;  %v1158_v3 = vadd.f32 %v1126_v61, %v2170_v25 }
  0xb6   :  { %v1152_v37 = vmul.f32 %v2657_v0, %v835_v51  ;;  %v1153_v15 = vmul.f32 %v2658_v62, %v835_v51  ;;  %v1154_v63 = vmul.f32 %v2659_v36, %v835_v51  ;;  %v2660_v14 = vld [vmem:[#allocation90_spill] sm:$0xff]  ;;  %v2661_v18 = vld [vmem:[#allocation91_spill] sm:$0xff]  ;;  %v1159_v48 = vadd.f32 %v1127_v7, %v2173_v21  ;;  %1189 = vst [vmem:[%s2426_s4] sm:$0xff] %v1157_v16 }
  0xb7   :  { %v1155_v8 = vmul.f32 %v2660_v14, %v835_v51  ;;  %v1156_v9 = vmul.f32 %v2661_v18, %v835_v51  ;;  %v1160_v39 = vadd.f32 %v1128_v4, %v2176_v20  ;;  %v1161_v44 = vadd.f32 %v1129_v17, %v2179_v11  ;;  %1190 = vst [vmem:[%s2426_s4 + $0x8] sm:$0xff] %v1158_v3  ;;  %v2667_v18 = vld [vmem:[#allocation18_spill] sm:$0xff]  ;;  %v2668_v61 = vld [vmem:[#allocation19_spill] sm:$0xff]  ;;  %v2669_v4 = vld [vmem:[#allocation20_spill] sm:$0xff] }
  0xb8   :  { %v1162_v0 = vadd.f32 %v1130_v47, %v2182_v12  ;;  %v1163_v62 = vadd.f32 %v1131_v59, %v2185_v30  ;;  %v1164_v36 = vadd.f32 %v1132_v54, %v2188_v46  ;;  %v1165_v14 = vadd.f32 %v1133_v2, %v2191_v27  ;;  %1191 = vst [vmem:[%s2426_s4 + $0x10] sm:$0xff] %v1159_v48  ;;  %v2670_v47 = vld [vmem:[#allocation21_spill] sm:$0xff]  ;;  %v2671_v54 = vld [vmem:[#allocation22_spill] sm:$0xff] }
  0xb9   :  { %v1166_v51 = vadd.f32 %v1134_v60, %v2194_v40  ;;  %v1167_v35 = vadd.f32 %v1135_v50, %v2197_v42  ;;  %v1168_v25 = vadd.f32 %v1136_v29, %v2200_v57  ;;  %1192 = vst [vmem:[%s2426_s4 + $0x18] sm:$0xff] %v1160_v39  ;;  %v1169_v21 = vadd.f32 %v1137_v23, %v2203_v52  ;;  %v2662_v57 = vld [vmem:[#allocation13_spill] sm:$0xff]  ;;  %v2672_v60 = vld [vmem:[#allocation23_spill] sm:$0xff] }
  0xba   :  { %v1170_v20 = vadd.f32 %v1138_v49, %v2206_v58  ;;  %v1171_v11 = vadd.f32 %v1139_v5, %v2209_v55  ;;  %v1172_v12 = vadd.f32 %v1140_v13, %v2212_v33  ;;  %1193 = vst [vmem:[%s2426_s4 + $0x20] sm:$0xff] %v1161_v44  ;;  %1194 = vst [vmem:[%s2426_s4 + $0x28] sm:$0xff] %v1162_v0  ;;  %v2663_v58 = vld [vmem:[#allocation14_spill] sm:$0xff]  ;;  %v2664_v33 = vld [vmem:[#allocation15_spill] sm:$0xff] }
  0xbb   :  { %1195 = vst [vmem:[%s2426_s4 + $0x30] sm:$0xff] %v1163_v62  ;;  %1196 = vst [vmem:[%s2426_s4 + $0x38] sm:$0xff] %v1164_v36  ;;  %v1173_v30 = vadd.f32 %v1141_v41, %v2215_v38  ;;  %v1174_v46 = vadd.f32 %v1142_v22, %v2218_v26  ;;  %v1175_v27 = vadd.f32 %v1143_v31, %v2221_v45  ;;  %v2665_v26 = vld [vmem:[#allocation16_spill] sm:$0xff] }
  0xbc   :  { %v1176_v40 = vadd.f32 %v1144_v53, %v2224_v32  ;;  %1197 = vst [vmem:[%s2426_s4 + $0x40] sm:$0xff] %v1165_v14  ;;  %1198 = vst [vmem:[%s2426_s4 + $0x48] sm:$0xff] %v1166_v51  ;;  %v1177_v42 = vadd.f32 %v1145_v56, %v2227_v10  ;;  %v1178_v52 = vadd.f32 %v1146_v19, %v2662_v57  ;;  %v2666_v32 = vld [vmem:[#allocation17_spill] sm:$0xff] }
  0xbd   :  { %1199 = vst [vmem:[%s2426_s4 + $0x50] sm:$0xff] %v1167_v35  ;;  %1200 = vst [vmem:[%s2426_s4 + $0x58] sm:$0xff] %v1168_v25  ;;  %v1179_v55 = vadd.f32 %v1147_v6, %v2663_v58  ;;  %v1180_v38 = vadd.f32 %v1148_v24, %v2664_v33  ;;  %v1181_v45 = vadd.f32 %v1149_v1, %v2665_v26 }
  0xbe   :  { %1201 = vst [vmem:[%s2426_s4 + $0x60] sm:$0xff] %v1169_v21  ;;  %1202 = vst [vmem:[%s2426_s4 + $0x68] sm:$0xff] %v1170_v20  ;;  %v1182_v10 = vadd.f32 %v1150_v34, %v2666_v32  ;;  %v1183_v43 = vadd.f32 %v1151_v28, %v2667_v18  ;;  %v1184_v7 = vadd.f32 %v1152_v37, %v2668_v61 }
  0xbf   :  { %1203 = vst [vmem:[%s2426_s4 + $0x70] sm:$0xff] %v1171_v11  ;;  %1204 = vst [vmem:[%s2426_s4 + $0x78] sm:$0xff] %v1172_v12  ;;  %v1185_v17 = vadd.f32 %v1153_v15, %v2669_v4  ;;  %v1186_v59 = vadd.f32 %v1154_v63, %v2670_v47  ;;  %v1187_v2 = vadd.f32 %v1155_v8, %v2671_v54 }
  0xc0   :  { %1205 = vst [vmem:[%s2426_s4 + $0x80] sm:$0xff] %v1173_v30  ;;  %1206 = vst [vmem:[%s2426_s4 + $0x88] sm:$0xff] %v1174_v46  ;;  %v1188_v50 = vadd.f32 %v1156_v9, %v2672_v60 }
  0xc1   :  { %1207 = vst [vmem:[%s2426_s4 + $0x90] sm:$0xff] %v1175_v27  ;;  %1208 = vst [vmem:[%s2426_s4 + $0x98] sm:$0xff] %v1176_v40 }
  0xc2   :  { %1209 = vst [vmem:[%s2426_s4 + $0xa0] sm:$0xff] %v1177_v42  ;;  %1210 = vst [vmem:[%s2426_s4 + $0xa8] sm:$0xff] %v1178_v52 }
  0xc3   :  { %1211 = vst [vmem:[%s2426_s4 + $0xb0] sm:$0xff] %v1179_v55  ;;  %1212 = vst [vmem:[%s2426_s4 + $0xb8] sm:$0xff] %v1180_v38 }
  0xc4   :  { %1213 = vst [vmem:[%s2426_s4 + $0xc0] sm:$0xff] %v1181_v45  ;;  %1214 = vst [vmem:[%s2426_s4 + $0xc8] sm:$0xff] %v1182_v10 }
  0xc5   :  { %1215 = vst [vmem:[%s2426_s4 + $0xd0] sm:$0xff] %v1183_v43  ;;  %1216 = vst [vmem:[%s2426_s4 + $0xd8] sm:$0xff] %v1184_v7 }
  0xc6   :  { %1217 = vst [vmem:[%s2426_s4 + $0xe0] sm:$0xff] %v1185_v17  ;;  %1218 = vst [vmem:[%s2426_s4 + $0xe8] sm:$0xff] %v1186_v59 }
  0xc7   :  { %1219 = vst [vmem:[%s2426_s4 + $0xf0] sm:$0xff] %v1187_v2  ;;  %1220 = vst [vmem:[%s2426_s4 + $0xf8] sm:$0xff] %v1188_v50 }

</bundles_post_ra>
